<compile_context>
chip_gen: v7x
topology: tpu7x:2x2x1
jax: 0.10.0
libtpu: 0.0.40
codegen_flags: <defaults>
</compile_context>

<pallas_src>
import jax
import jax.numpy as jnp
from jax.experimental import pallas as pl
from jax.experimental.pallas import tpu as pltpu

LANE = 128      # f32 vreg lane width
SUBLANE = 8     # f32 vreg sublane count


def _round_up(n, m):
    return ((n + m - 1) // m) * m


def _make_mlp_kernel(num_layers, k_pad):
    """Fused MLP forward.

    x_ref: (TB, k_pad)            -- batch tile (native input width, sublane aligned)
    w_ref: (L, 128, 128) bf16     -- hidden layers: (in, out) zero-padded; head: row 0 holds
                                     the (fan_in,)-vector of head weights (lane layout)
    b_ref: (L, 1, 128) f32        -- per-layer bias rows, zero-padded (head bias at lane 0)
    o_ref: (TB, 1) f32            -- regression output per row
    Zero padding keeps padded lanes exactly zero through every ReLU layer, so padding never
    contaminates real outputs.
    """
    assert num_layers >= 2, "expects at least one hidden layer (input -> hidden -> 1)"

    def kernel(x_ref, w_ref, b_ref, o_ref):
        # Layer 0: contract only over the real (sublane-aligned) input width.
        h = jnp.dot(x_ref[...].astype(jnp.bfloat16), w_ref[0, :k_pad, :],
                    preferred_element_type=jnp.float32)
        h = jnp.maximum(h + b_ref[0], 0.0)
        # Dropout(0.1) in eval mode == identity -> elided.
        # TODO(synk): training-mode dropout would need pltpu.prng_seed + prng_random_bits masking.
        for l in range(1, num_layers - 1):
            h = jnp.dot(h.astype(jnp.bfloat16), w_ref[l],
                        preferred_element_type=jnp.float32)
            h = jnp.maximum(h + b_ref[l], 0.0)
        # Regression head (out_features == 1): VPU broadcast-multiply + lane reduce instead of
        # an MXU dot into a 128-lane slab -> writes 4 B/row instead of 512 B/row.
        w_row = w_ref[num_layers - 1, 0:1, :].astype(jnp.float32)          # (1, 128)
        y = jnp.sum(h * w_row, axis=-1, keepdims=True)                     # (TB, 1) f32
        o_ref[...] = y + b_ref[num_layers - 1, 0:1, 0:1]                   # + head bias

    return kernel


def prepare_params(params):
    """One-time packing, OUTSIDE the per-call path.

    Hidden layers: PyTorch (out, in) weights -> transpose to (in, out), zero-pad to (128,128).
    Head (out_features == 1): store the weight vector in row 0 (lane layout) so the kernel can
    broadcast-multiply + lane-reduce.  Stack into one bf16 (L,128,128) slab (native MXU path,
    half the DMA).  Biases zero-pad to a single f32 (L,1,128) slab.
    """
    L = len(params)
    assert L >= 2, "expects at least one hidden layer"
    ws, bs = [], []
    for idx, (w, b) in enumerate(params):
        w = jnp.asarray(w, jnp.float32)
        b = jnp.asarray(b, jnp.float32)
        fan_out, fan_in = w.shape
        assert fan_in <= LANE and fan_out <= LANE, "layer dims > 128 need K/N tiling"
        if idx < L - 1:
            wt = jnp.pad(w.T, ((0, LANE - fan_in), (0, LANE - fan_out)))       # (128, 128)
        else:
            assert fan_out == 1, "regression head must have out_features == 1"
            wt = jnp.zeros((LANE, LANE), jnp.float32).at[0, :fan_in].set(w[0])  # row-form head
        bp = jnp.pad(b, (0, LANE - fan_out))[None, :]                           # (1, 128)
        ws.append(wt)
        bs.append(bp)
    return jnp.stack(ws).astype(jnp.bfloat16), jnp.stack(bs)


@jax.jit
def regression_nn_forward(x, w_packed, b_packed):
    """x: (B, input_size). Returns (B, 1) float32 regression output."""
    B, K = x.shape
    L = int(w_packed.shape[0])
    assert K <= LANE, "input_size > 128 needs K tiling"
    k_pad = _round_up(K, SUBLANE)   # only pad the input width to a sublane multiple (not 128)

    # Batch tiling: big serial tiles (<=1024 rows) amortize ~0.35us/step on single-TC v5e/v6e;
    # once the batch is large enough (>=512 rows), split into >=2 balanced tiles so v7x's
    # second TensorCore has work; balanced tiles avoid a near-empty padded last tile.
    B8 = _round_up(max(B, SUBLANE), SUBLANE)
    ntiles = pl.cdiv(B8, 1024)
    if B8 >= 512:
        ntiles = max(ntiles, 2)
    TB = _round_up(pl.cdiv(B8, ntiles), SUBLANE)
    Bp = TB * pl.cdiv(B8, TB)

    # Pad batch rows (and input width only up to the next multiple of 8) with zeros.
    xp = jnp.pad(x, ((0, Bp - B), (0, k_pad - K)))

    flops = 2 * Bp * (k_pad * LANE + max(L - 2, 0) * LANE * LANE + LANE)
    bytes_accessed = (xp.size * jnp.dtype(xp.dtype).itemsize
                      + w_packed.size * 2 + b_packed.size * 4 + Bp * 4)

    out = pl.pallas_call(
        _make_mlp_kernel(L, k_pad),
        out_shape=jax.ShapeDtypeStruct((Bp, 1), jnp.float32),
        grid_spec=pltpu.PrefetchScalarGridSpec(
            num_scalar_prefetch=0,
            grid=(Bp // TB,),
            in_specs=[
                pl.BlockSpec((TB, k_pad), lambda i: (i, 0)),          # x batch tile
                pl.BlockSpec((L, LANE, LANE), lambda i: (0, 0, 0)),   # all weights, pinned
                pl.BlockSpec((L, 1, LANE), lambda i: (0, 0, 0)),      # all biases, pinned
            ],
            out_specs=pl.BlockSpec((TB, 1), lambda i: (i, 0)),
        ),
        compiler_params=pltpu.CompilerParams(
            dimension_semantics=("parallel",),          # shard batch tiles across TCs (v7x)
            vmem_limit_bytes=32 * 1024 * 1024,          # safe on v5e/v6e and v7x (64 MiB phys)
        ),
        cost_estimate=pl.CostEstimate(flops=int(flops), transcendentals=0,
                                      bytes_accessed=int(bytes_accessed)),
    )(xp, w_packed, b_packed)

    return out[:B]


def init_params(key, input_size, hidden_sizes):
    """Deterministic init mirroring nn.Linear shapes: W (out, in), b (out,)."""
    layer_sizes = [input_size] + list(hidden_sizes) + [1]
    params = []
    for i in range(len(layer_sizes) - 1):
        fan_in, fan_out = layer_sizes[i], layer_sizes[i + 1]
        key, kw, kb = jax.random.split(key, 3)
        bound = 1.0 / (fan_in ** 0.5)
        w = jax.random.uniform(kw, (fan_out, fan_in), jnp.float32, -bound, bound)
        b = jax.random.uniform(kb, (fan_out,), jnp.float32, -bound, bound)
        params.append((w, b))
    return params


def reference_forward(x, params):
    """Pure-JAX f32 reference of the PyTorch forward (eval mode: dropout = identity)."""
    h = x
    for (w, b) in params[:-1]:
        h = jnp.maximum(h @ w.T + b, 0.0)
    w, b = params[-1]
    return h @ w.T + b


if __name__ == "__main__":
    # Small shapes consistent with the module: batch=8, input_size=32, hidden_sizes=[64, 32].
    key = jax.random.PRNGKey(0)
    kx, kp = jax.random.split(key)

    input_size = 32
    hidden_sizes = [64, 32]
    batch = 8

    x = jax.random.normal(kx, (batch, input_size), jnp.float32)
    params = init_params(kp, input_size, hidden_sizes)

    # One-time packing (would live at model-init time in a real deployment).
    w_packed, b_packed = prepare_params(params)

    out = regression_nn_forward(x, w_packed, b_packed)
    out = jax.block_until_ready(out)

    ref = reference_forward(x, params)
    assert out.shape == (batch, 1), out.shape
    # bf16 matmul operands with f32 accumulation -> compare against the f32 reference with a
    # tolerance appropriate for bf16 (values here are O(1), observed error ~1e-3).
    max_err = float(jnp.max(jnp.abs(out - ref)))
    assert jnp.allclose(out, ref, atol=2e-2, rtol=2e-2), f"mismatch vs reference (max err {max_err})"

    print("KERNEL_OK")
</pallas_src>

<mosaic_0001>
module attributes {stable_mosaic.version = 11 : i64} {
  func.func @kernel(%arg0: i32, %arg1: memref<8x32xf32, #tpu.memory_space<vmem>>, %arg2: memref<3x128x128xbf16, #tpu.memory_space<vmem>>, %arg3: memref<3x1x128xf32, #tpu.memory_space<vmem>>, %arg4: memref<8x1xf32, #tpu.memory_space<vmem>>) attributes {dimension_semantics = [#tpu.dimension_semantics<parallel>], iteration_bounds = array<i64: 1>, scalar_prefetch = 0 : i64, scratch_operands = 0 : i64, tpu.core_type = #tpu.core_type<tc>, window_params = [{transform_indices = @transform_0, window_bounds = array<i64: 8, 32>}, {pipeline_mode = #tpu.pipeline_mode<synchronous>, transform_indices = @transform_1, window_bounds = array<i64: 3, 128, 128>}, {pipeline_mode = #tpu.pipeline_mode<synchronous>, transform_indices = @transform_2, window_bounds = array<i64: 3, 1, 128>}, {transform_indices = @transform_3, window_bounds = array<i64: 8, 1>}]} {
    %c0 = arith.constant 0 : index
    %c0_0 = arith.constant 0 : index
    %0 = vector.load %arg1[%c0, %c0_0] : memref<8x32xf32, #tpu.memory_space<vmem>>, vector<8x32xf32>
    %1 = arith.truncf %0 : vector<8x32xf32> to vector<8x32xbf16>
    %c0_1 = arith.constant 0 : index
    %c0_2 = arith.constant 0 : index
    %c0_3 = arith.constant 0 : index
    %2 = vector.load %arg2[%c0_1, %c0_2, %c0_3] : memref<3x128x128xbf16, #tpu.memory_space<vmem>>, vector<1x32x128xbf16>
    %3 = vector.shape_cast %2 : vector<1x32x128xbf16> to vector<32x128xbf16>
    %cst = arith.constant dense<0.000000e+00> : vector<8x128xf32>
    %4 = tpu.matmul %1, %3, %cst {dimension_numbers = #tpu.dot_dimension_numbers<[1], [0], [0], [1], [0, 0, 1, 1], [], []>} : vector<8x32xbf16>, vector<32x128xbf16>, vector<8x128xf32> -> vector<8x128xf32>
    %c0_4 = arith.constant 0 : index
    %c0_5 = arith.constant 0 : index
    %c0_6 = arith.constant 0 : index
    %5 = vector.load %arg3[%c0_4, %c0_5, %c0_6] : memref<3x1x128xf32, #tpu.memory_space<vmem>>, vector<1x1x128xf32>
    %6 = vector.shape_cast %5 : vector<1x1x128xf32> to vector<1x128xf32>
    %7 = vector.broadcast %6 : vector<1x128xf32> to vector<8x128xf32>
    %8 = arith.addf %4, %7 : vector<8x128xf32>
    %cst_7 = arith.constant 0.000000e+00 : f32
    %9 = vector.broadcast %cst_7 : f32 to vector<8x128xf32>
    %10 = arith.maximumf %8, %9 : vector<8x128xf32>
    %11 = arith.truncf %10 : vector<8x128xf32> to vector<8x128xbf16>
    %c1 = arith.constant 1 : index
    %c0_8 = arith.constant 0 : index
    %c0_9 = arith.constant 0 : index
    %12 = vector.load %arg2[%c1, %c0_8, %c0_9] : memref<3x128x128xbf16, #tpu.memory_space<vmem>>, vector<1x128x128xbf16>
    %13 = vector.shape_cast %12 : vector<1x128x128xbf16> to vector<128x128xbf16>
    %cst_10 = arith.constant dense<0.000000e+00> : vector<8x128xf32>
    %14 = tpu.matmul %11, %13, %cst_10 {dimension_numbers = #tpu.dot_dimension_numbers<[1], [0], [0], [1], [0, 0, 1, 1], [], []>} : vector<8x128xbf16>, vector<128x128xbf16>, vector<8x128xf32> -> vector<8x128xf32>
    %c1_11 = arith.constant 1 : index
    %c0_12 = arith.constant 0 : index
    %c0_13 = arith.constant 0 : index
    %15 = vector.load %arg3[%c1_11, %c0_12, %c0_13] : memref<3x1x128xf32, #tpu.memory_space<vmem>>, vector<1x1x128xf32>
    %16 = vector.shape_cast %15 : vector<1x1x128xf32> to vector<1x128xf32>
    %17 = vector.broadcast %16 : vector<1x128xf32> to vector<8x128xf32>
    %18 = arith.addf %14, %17 : vector<8x128xf32>
    %cst_14 = arith.constant 0.000000e+00 : f32
    %19 = vector.broadcast %cst_14 : f32 to vector<8x128xf32>
    %20 = arith.maximumf %18, %19 : vector<8x128xf32>
    %c2 = arith.constant 2 : index
    %c0_15 = arith.constant 0 : index
    %c0_16 = arith.constant 0 : index
    %21 = vector.load %arg2[%c2, %c0_15, %c0_16] : memref<3x128x128xbf16, #tpu.memory_space<vmem>>, vector<1x1x128xbf16>
    %22 = vector.shape_cast %21 : vector<1x1x128xbf16> to vector<1x128xbf16>
    %23 = arith.extf %22 : vector<1x128xbf16> to vector<1x128xf32>
    %24 = vector.broadcast %23 : vector<1x128xf32> to vector<8x128xf32>
    %25 = arith.mulf %20, %24 : vector<8x128xf32>
    %cst_17 = arith.constant dense<0.000000e+00> : vector<8xf32>
    %26 = vector.multi_reduction <add>, %25, %cst_17 [1] : vector<8x128xf32> to vector<8xf32>
    %27 = vector.shape_cast %26 : vector<8xf32> to vector<8x1xf32>
    %c2_18 = arith.constant 2 : index
    %c0_19 = arith.constant 0 : index
    %c0_20 = arith.constant 0 : index
    %28 = vector.load %arg3[%c2_18, %c0_19, %c0_20] : memref<3x1x128xf32, #tpu.memory_space<vmem>>, vector<1x1x1xf32>
    %29 = vector.shape_cast %28 : vector<1x1x1xf32> to vector<1x1xf32>
    %30 = vector.broadcast %29 : vector<1x1xf32> to vector<8x1xf32>
    %31 = arith.addf %27, %30 : vector<8x1xf32>
    %c0_21 = arith.constant 0 : index
    %c0_22 = arith.constant 0 : index
    %32 = vector.load %arg4[%c0_21, %c0_22] : memref<8x1xf32, #tpu.memory_space<vmem>>, vector<8x1xf32>
    tpu.vector_store %arg4[%c0_21, %c0_22], %31 {strides = array<i32>} : memref<8x1xf32, #tpu.memory_space<vmem>>, vector<8x1xf32>,
    return
  }
  func.func @transform_0(%arg0: i32) -> (i32, i32) {
    %c0_i32 = arith.constant 0 : i32
    %c0_i32_0 = arith.constant 0 : i32
    return %arg0, %c0_i32 : i32, i32
  }
  func.func @transform_1(%arg0: i32) -> (i32, i32, i32) {
    %c0_i32 = arith.constant 0 : i32
    %c0_i32_0 = arith.constant 0 : i32
    %c0_i32_1 = arith.constant 0 : i32
    %c0_i32_2 = arith.constant 0 : i32
    return %c0_i32, %c0_i32_0, %c0_i32_1 : i32, i32, i32
  }
  func.func @transform_2(%arg0: i32) -> (i32, i32, i32) {
    %c0_i32 = arith.constant 0 : i32
    %c0_i32_0 = arith.constant 0 : i32
    %c0_i32_1 = arith.constant 0 : i32
    %c0_i32_2 = arith.constant 0 : i32
    return %c0_i32, %c0_i32_0, %c0_i32_1 : i32, i32, i32
  }
  func.func @transform_3(%arg0: i32) -> (i32, i32) {
    %c0_i32 = arith.constant 0 : i32
    %c0_i32_0 = arith.constant 0 : i32
    return %arg0, %c0_i32 : i32, i32
  }
}

</mosaic_0001>

<bundles_post_ra>
// kernel: regression_nn_forward.1
= control target key start
LH: loop header
LB: loop body
LE: loop exit
PB: predicated region body
PF: predicated region fallthrough
CT: control target
= control target key end

     0   :  { %8 = vsyncpa [#allocation3], 0  ;;  %s442_s0 = inlined_call_operand.hbm [shape: f32[8,32], index: 0, kind: input, shape index: {}]   ;;  %s443_s1 = inlined_call_operand.hbm [shape: bf16[3,128,128], index: 1, kind: input, shape index: {}]   ;;  %s444_s2 = inlined_call_operand.vmem [shape: f32[3,1,128], index: 2, kind: input, shape index: {}]   ;;  %s445_s3 = inlined_call_operand.vmem [shape: f32[8,1], index: 3, kind: output, shape index: {}]  }
   0x1   :  { %9 = vsyncpa [#allocation5], 0  ;;  %s373_s12 = smov [#allocation2]   ;;  %s374_s14 = smov [#allocation4]  }
   0x2   :  { %s16_s13 = sshll.u32 %s373_s12, 4  ;;  %s25_s15 = sshll.u32 %s374_s14, 4  ;;  %s17_s13 = int_to_ptr.vmem [resolvable:$true] %s16_s13  ;;  %s399_s15 = int_to_ptr.vmem [resolvable:$true] %s25_s15 }
   0x3   :  { %s325_s18 = scalar_lea.hbm %s442_s0, 128 }
   0x4   :  { %p326_p0 = scmp.ne.s32.totalorder %s442_s0, %s325_s18  ;;  %p329_p1 = scmp.lt.u32.totalorder %s325_s18, %s442_s0 }
   0x6   :  { %p331_p2 = pnand %p329_p1, %p326_p0 }
   0x8   :  { %334 = shalt.err (!%p331_p2)
}
   0x9   :  { %s335_s23 = scalar_lea.vmem %s17_s13, 128  ;;  %p340_p4 = scmp.lt.s32.totalorder %s17_s13, %s17_s13 }
   0xa   :  { %p336_p3 = scmp.ne.s32.totalorder %s17_s13, %s335_s23  ;;  %p341_p5 = scmp.lt.s32.totalorder %s335_s23, %s335_s23 }
   0xc   :  { %p342_p6 = por %p341_p5, %p340_p4 }
   0xe   :  { %p343_p7 = pnand %p342_p6, %p336_p3 }
  0x10   :  { %346 = shalt.err (!%p343_p7)
}
  0x11   :  { %19 = dma.hbm_to_vmem [thread:$0]  %s442_s0, 128, %s17_s13, [#allocation3]  }
  0x12   :  { %s347_s28 = scalar_lea.hbm %s443_s1, 3072 }
  0x13   :  { %p348_p8 = scmp.ne.s32.totalorder %s443_s1, %s347_s28  ;;  %p351_p9 = scmp.lt.u32.totalorder %s347_s28, %s443_s1 }
  0x15   :  { %p353_p10 = pnand %p351_p9, %p348_p8 }
  0x17   :  { %356 = shalt.err (!%p353_p10)
}
  0x18   :  { %s357_s6 = scalar_lea.vmem %s399_s15, 3072  ;;  %p362_p12 = scmp.lt.s32.totalorder %s399_s15, %s399_s15 }
  0x19   :  { %p358_p11 = scmp.ne.s32.totalorder %s399_s15, %s357_s6  ;;  %p363_p13 = scmp.lt.s32.totalorder %s357_s6, %s357_s6 }
  0x1b   :  { %p364_p0 = por %p363_p13, %p362_p12 }
  0x1d   :  { %p365_p1 = pnand %p364_p0, %p358_p11 }
  0x1f   :  { %368 = shalt.err (!%p365_p1)
}
  0x20   :  { %s375_s0 = smov 64   ;;  %s376_s7 = smov 4  }
  0x21   :  { %31 = dma.hbm_to_vmem [thread:$0]  %s443_s1, 3072, %s399_s15, [#allocation5], %s375_s0, %s375_s0, %s376_s7  }
  0x22   :  { %369 = dma.done.wait [#allocation3], 128  }
  0x23   :  { %370 = vsyncadd [#allocation3], 4294967168 }
  0x24   :  { %371 = dma.done.wait [#allocation5], 3072  }
  0x25   :  { %372 = vsyncadd [#allocation5], 4294964224  ;;  %v377_v0 = vmov 0.0   ;;  %vm378_vm0 = vmmov 0   ;;  %v315_v1 = vld [vmem:[#allocation4] sm:$0xff]   ;;  %v316_v2 = vld [vmem:[#allocation4 + $0x8] sm:$0xff]   ;;  %v229_v21 = vlaneseq }
  0x26   :  { %281 = vmatprep.subr.bf16.mxu0 %v377_v0  ;;  %285 = vmatprep.mubr.msk.bf16.mxu0 %vm378_vm0, %v377_v0  ;;  %v41_v3 = vld [vmem:[#allocation2] sm:$0xff]  ;;  %v317_v4 = vld [vmem:[#allocation4 + $0x40] sm:$0xff]   ;;  %v318_v6 = vld [vmem:[#allocation4 + $0x48] sm:$0xff]   ;;  %vm66_vm1 = vcmask 261120   ;;  %vm245_vm2 = vcmask 7168  }
  0x27   :  { %289 = vmatprep.subr.bf16.mxu1 %v377_v0  ;;  %305 = vmatprep.mubr.msk.bf16.mxu1 %vm378_vm0, %v377_v0  ;;  %v42_v5 = vpack.c.bf16 %v41_v3, %v41_v3  ;;  %v319_v7 = vld [vmem:[#allocation4 + $0x50] sm:$0xff]   ;;  %v320_v8 = vld [vmem:[#allocation4 + $0x58] sm:$0xff]   ;;  %v321_v9 = vld [vmem:[#allocation4 + $0x60] sm:$0xff]   ;;  %v230_v22 = vshrl.u32 %v229_v21, 7 }
  0x28   :  { %282 = vmatpush3.bf16.msra.mxu0 %v315_v1  ;;  %290 = vmatpush3.bf16.msra.mxu1 %v317_v4  ;;  %v322_v10 = vld [vmem:[#allocation4 + $0x68] sm:$0xff]   ;;  %v323_v11 = vld [vmem:[#allocation4 + $0x70] sm:$0xff]   ;;  %v324_v12 = vld [vmem:[#allocation4 + $0x78] sm:$0xff]  }
  0x29   :  { %283 = vmatprep.subr.bf16.mxu0 %v377_v0  ;;  %291 = vmatprep.subr.bf16.mxu1 %v377_v0  ;;  %v253_v13 = vld [vmem:[%s444_s2] ss:$0 sm:$0xff]  ;;  %v227_v23 = vld [vmem:[#allocation4 + $0x80] sm:$0x1]  ;;  %v231_v25 = vsub.s32 0, %v230_v22 }
  0x2a   :  { %v228_v24 = vunpack.c.l.bf16 %v227_v23  ;;  %v258_v26 = vld [vmem:[%s444_s2 + $0x1] ss:$0 sm:$0xff]  ;;  %v268_v35 = vld [vmem:[%s444_s2 + $0x2] ss:$0 sm:$0xff] }
  0x2c   :  { %284 = vmatpush3.bf16.msra.mxu0 %v316_v2  ;;  %292 = vmatpush3.bf16.msra.mxu1 %v318_v6  ;;  %v232_v30 = vrot.slane %v228_v24, %v231_v25 }
  0x2d   :  { %293 = vmatprep.subr.bf16.mxu1 %v377_v0 }
  0x2f   :  { %286 = vmatmul.mubr.msk.bf16.vlgmr.msra.gmra.mrb[0].mxu0 %vm66_vm1, %v42_v5 }
  0x30   :  { %294 = vmatpush3.bf16.msra.mxu1 %v319_v7 }
  0x31   :  { %295 = vmatprep.subr.bf16.mxu1 %v377_v0 }
  0x34   :  { %296 = vmatpush3.bf16.msra.mxu1 %v320_v8 }
  0x35   :  { %297 = vmatprep.subr.bf16.mxu1 %v377_v0 }
  0x38   :  { %298 = vmatpush3.bf16.msra.mxu1 %v321_v9 }
  0x39   :  { %299 = vmatprep.subr.bf16.mxu1 %v377_v0 }
  0x3c   :  { %300 = vmatpush3.bf16.msra.mxu1 %v322_v10 }
  0x3d   :  { %301 = vmatprep.subr.bf16.mxu1 %v377_v0 }
  0x40   :  { %302 = vmatpush3.bf16.msra.mxu1 %v323_v11 }
  0x41   :  { %303 = vmatprep.subr.bf16.mxu1 %v377_v0 }
  0x44   :  { %304 = vmatpush3.bf16.msra.mxu1 %v324_v12 }
 0x102   :  { %v104_v14 = vpop.f32.mrb[0].mxu0 }
 0x103   :  { %v105_v15 = vadd.f32 %v253_v13, %v104_v14  ;;  %v287_v16 = vpop.f32.mrb[1].mxu0 }
 0x104   :  { %v107_v17 = vpop.f32.mrb[2].mxu0 }
 0x105   :  { %v110_v18 = vmax.f32 %v105_v15, 0.0  ;;  %v288_v19 = vpop.f32.mrb[3].mxu0 }
 0x107   :  { %v111_v20 = vpack.c.bf16 %v110_v18, %v110_v18 }
 0x109   :  { %306 = vmatmul.mubr.bf16.vlgmr.msra.gmra.mrb[0].mxu1 %v111_v20 }
 0x1dc   :  { %v219_v27 = vpop.f32.mrb[0].mxu1 }
 0x1dd   :  { %v220_v28 = vadd.f32 %v258_v26, %v219_v27  ;;  %v307_v29 = vpop.f32.mrb[1].mxu1 }
 0x1de   :  { %v222_v31 = vpop.f32.mrb[2].mxu1 }
 0x1df   :  { %v225_v32 = vmax.f32 %v220_v28, 0.0  ;;  %v308_v33 = vpop.f32.mrb[3].mxu1 }
 0x1e1   :  { %v233_v34 = vmul.f32 %v232_v30, %v225_v32 }
 0x1e3   :  { %234 = vadd.xlane.f32.xlu0 %v233_v34 }
 0x270   :  { %v235_v36 = vpop.xlane.xlu0 %234 }
 0x271   :  { %v244_v37 = vadd.f32 %v268_v35, %v235_v36 }
 0x273   :  { %246 = vst.msk [vmem:[%s445_s3] sm:$0xff] %vm245_vm2, %v244_v37 }
 0x274   :  { %251 = vsyncpa [#allocation3], 1 }
 0x275   :  { %252 = vsyncpa [#allocation5], 1 }

</bundles_post_ra>
